<compile_context>
chip_gen: v7x
topology: tpu7x:2x2x1
jax: 0.10.0
libtpu: 0.0.40
codegen_flags: <defaults>
</compile_context>

<pallas_src>
import functools

import jax
import jax.numpy as jnp
from jax.experimental import pallas as pl
from jax.experimental.pallas import tpu as pltpu


OUT_LANES = 128   # lane-dense packed output width (one full vreg lane tile)
TB_MAX = 1024     # batch-tile cap; per-step VMEM stays well under budget


def _round_up(x, m):
    return (x + m - 1) // m * m


def _cdiv(a, b):
    return -(-a // b)


# ------------------------- Pallas kernel -------------------------------------

def actor_kernel(s_ref, p1_ref, p2_ref, mv_ref, out_ref, *,
                 action_dim, state_dim, k2p, w3_row):
    s = s_ref[...]                                   # [TB, S]

    # --- fused layer 1: s @ [fc1.W | cpn.fc1.W | 0] + [b | cb | ..1..], ReLU.
    # The bias row also plants a 1.0 at lane BL (= k2) so layer 2's biases
    # can be folded into the next matmul (y[:, BL] == relu(1) == 1).
    w1 = p1_ref[0:state_dim, :]                      # [S, K2P]
    b1 = p1_ref[state_dim:state_dim + 1, :]          # [1, K2P]
    y = jnp.maximum(jnp.dot(s, w1, preferred_element_type=jnp.float32) + b1, 0.0)

    # --- fused layer 2: y @ block-diag([fc2.W, cpn.fc2.W, 0]) with biases on
    # row BL of the slab (multiplied by y[:, BL] == 1) -> no separate add.
    w2 = p2_ref[0:k2p, :]                            # [K2P, 128]
    z = jnp.dot(y, w2, preferred_element_type=jnp.float32)        # [TB, 128]

    mv = mv_ref[0, 0]
    # z[:, 0:16] = fc2(h)+b2; z[:, 16:32] = [cpn pre-tanh | 0] (== cat w/ zeros)
    ai = jnp.maximum(z[:, 0:16] + jnp.tanh(z[:, 16:32]) * mv, 0.0)  # [TB, 16]

    # --- head fused with lane packing: ai @ [fc3.W | I16 | 0] + [b3 | 0] -----
    w3 = p2_ref[w3_row:w3_row + 16, :]               # [16, 128]
    b3 = p2_ref[w3_row + 16:w3_row + 17, :]          # [1, 128]
    pre = jnp.dot(ai, w3, preferred_element_type=jnp.float32) + b3  # [TB, 128]
    # cols 0:A = fc3 pre-activation (needs tanh); cols A:A+16 = ai verbatim.
    lane = jax.lax.broadcasted_iota(jnp.int32, pre.shape, 1)
    out_ref[...] = jnp.where(lane < action_dim, jnp.tanh(pre), pre)


# ------------------------- wrapper -------------------------------------------

def _choose_tile(B):
    """Batch tile: fat enough to amortize the ~0.35us/step overhead, at least
    2 grid steps for v7x megacore when B >= 16, minimal padding otherwise."""
    if B <= 8:
        return 8
    min_steps = 2 if B >= 16 else 1
    steps = max(min_steps, _cdiv(B, TB_MAX))
    return _round_up(_cdiv(B, steps), 8)


def super_lesioned_actor_forward(state, packed):
    slab1 = packed["slab1"]
    slab2 = packed["slab2"]
    mv = packed["max_value"]
    action_dim = packed["action_dim"]
    w3_row = packed["w3_row"]
    k2p = packed["k2p"]

    B, state_dim = state.shape
    TB = _choose_tile(B)
    B_pad = _round_up(B, TB)
    if B_pad != B:
        state = jnp.pad(state, ((0, B_pad - B), (0, 0)))
    grid = (B_pad // TB,)

    kernel = functools.partial(actor_kernel, action_dim=action_dim,
                               state_dim=state_dim, k2p=k2p, w3_row=w3_row)

    flops = int(2 * B_pad * (state_dim * k2p + k2p * OUT_LANES + 16 * OUT_LANES))
    transcendentals = int(B_pad * (16 + OUT_LANES))
    bytes_accessed = int(4 * (state.size + slab1.size + slab2.size + mv.size
                              + B_pad * OUT_LANES))

    out_slab = pl.pallas_call(
        kernel,
        out_shape=jax.ShapeDtypeStruct((B_pad, OUT_LANES), jnp.float32),
        grid=grid,
        in_specs=[
            pl.BlockSpec((TB, state_dim), lambda i: (i, 0)),
            pl.BlockSpec(slab1.shape, lambda i: (0, 0)),   # weights stay resident
            pl.BlockSpec(slab2.shape, lambda i: (0, 0)),
            pl.BlockSpec(memory_space=pltpu.MemorySpace.SMEM),  # max_value scalar
        ],
        out_specs=pl.BlockSpec((TB, OUT_LANES), lambda i: (i, 0)),
        compiler_params=pltpu.CompilerParams(
            dimension_semantics=("parallel",)),
        cost_estimate=pl.CostEstimate(
            flops=flops, transcendentals=transcendentals,
            bytes_accessed=bytes_accessed),
    )(state, slab1, slab2, mv)

    # NOTE: downstream jitted consumers should prefer consuming `out_slab`
    # directly (action = cols 0:A, actor_input = cols A:A+16) to avoid the two
    # extra XLA slice passes below; kept here for the public (a, actor_input)
    # interface that matches the PyTorch module.
    a = out_slab[:B, 0:action_dim]
    actor_input = out_slab[:B, action_dim:action_dim + 16]
    return a, actor_input


# ------------------------- deterministic init --------------------------------

def xavier_uniform(key, fan_in, fan_out):
    # matches nn.init.xavier_uniform_ on a [out, in] weight; we emit [in, out]
    limit = (6.0 / (fan_in + fan_out)) ** 0.5
    return jax.random.uniform(key, (fan_in, fan_out), jnp.float32, -limit, limit)


def linear_bias(key, fan_in, fan_out):
    # PyTorch Linear default bias init: U(-1/sqrt(fan_in), 1/sqrt(fan_in))
    bound = 1.0 / (fan_in ** 0.5)
    return jax.random.uniform(key, (1, fan_out), jnp.float32, -bound, bound)


def make_params(key, state_dim, action_dim, hidden_dim,
                cpn_input_dim=400, cpn_output_dim=8, max_value=1.0):
    ks = jax.random.split(key, 10)
    p = {}
    p["w1"] = xavier_uniform(ks[0], state_dim, hidden_dim)
    p["b1"] = linear_bias(ks[1], state_dim, hidden_dim)
    p["w2"] = xavier_uniform(ks[2], hidden_dim, 16)
    p["b2"] = linear_bias(ks[3], hidden_dim, 16)
    p["w3"] = jax.random.uniform(ks[4], (16, action_dim), jnp.float32, -0.003, 0.003)
    p["b3"] = linear_bias(ks[5], 16, action_dim)
    p["cw1"] = xavier_uniform(ks[6], state_dim, cpn_input_dim)
    p["cb1"] = linear_bias(ks[7], state_dim, cpn_input_dim)
    p["cw2"] = xavier_uniform(ks[8], cpn_input_dim, cpn_output_dim)
    p["cb2"] = linear_bias(ks[9], cpn_input_dim, cpn_output_dim)
    p["max_value"] = float(max_value)
    p["dims"] = (state_dim, action_dim, hidden_dim, cpn_input_dim, cpn_output_dim)
    return p


def pack_params(p):
    """Pack all weights/biases into two contiguous f32 slabs (dense K tiles)."""
    state_dim, action_dim, hidden_dim, cpn_input_dim, cpn_output_dim = p["dims"]
    assert cpn_output_dim <= 16 and action_dim + 16 <= OUT_LANES
    k2 = hidden_dim + cpn_input_dim
    k2p = _round_up(k2 + 1, 128)      # dense 128-lane K tiles + spare "bias lane"
    bl = k2                           # bias lane: y[:, bl] == 1 at runtime

    # Slab 1 [S+1, K2P]: rows 0:S = [w1 | cw1 | 0], row S = [b1 | cb1 | ..1..].
    slab1 = jnp.zeros((state_dim + 1, k2p), jnp.float32)
    slab1 = slab1.at[0:state_dim, 0:hidden_dim].set(p["w1"])
    slab1 = slab1.at[0:state_dim, hidden_dim:k2].set(p["cw1"])
    slab1 = slab1.at[state_dim, 0:hidden_dim].set(p["b1"][0])
    slab1 = slab1.at[state_dim, hidden_dim:k2].set(p["cb1"][0])
    slab1 = slab1.at[state_dim, bl].set(1.0)

    # Slab 2 [R, 128]: block-diagonal second layer with its biases on row bl
    # (picked up by y[:, bl] == 1), then fc3 fused with a 16x16 identity and
    # an fc3 bias row (zero under the identity columns).
    w3_row = k2p                       # multiple of 128 -> aligned
    total_rows = _round_up(w3_row + 17, 8)
    slab2 = jnp.zeros((total_rows, OUT_LANES), jnp.float32)
    slab2 = slab2.at[0:hidden_dim, 0:16].set(p["w2"])
    slab2 = slab2.at[hidden_dim:k2, 16:16 + cpn_output_dim].set(p["cw2"])
    slab2 = slab2.at[bl, 0:16].set(p["b2"][0])
    slab2 = slab2.at[bl, 16:16 + cpn_output_dim].set(p["cb2"][0])
    slab2 = slab2.at[w3_row:w3_row + 16, 0:action_dim].set(p["w3"])
    slab2 = slab2.at[w3_row:w3_row + 16,
                     action_dim:action_dim + 16].set(jnp.eye(16, dtype=jnp.float32))
    slab2 = slab2.at[w3_row + 16, 0:action_dim].set(p["b3"][0])

    return {
        "slab1": slab1,
        "slab2": slab2,
        "max_value": jnp.full((1, 1), p["max_value"], jnp.float32),
        "action_dim": action_dim,
        "w3_row": w3_row,
        "k2p": k2p,
    }


# ------------------------- pure-JAX reference ---------------------------------

def reference_forward(state, p):
    B = state.shape[0]
    h = jnp.maximum(state @ p["w1"] + p["b1"], 0.0)
    x2 = h @ p["w2"] + p["b2"]
    ch = jnp.maximum(state @ p["cw1"] + p["cb1"], 0.0)
    cpn = jnp.tanh(ch @ p["cw2"] + p["cb2"]) * p["max_value"]
    cpn = jnp.concatenate(
        [cpn, jnp.zeros((B, 16 - cpn.shape[1]), jnp.float32)], axis=1)
    ai = jnp.maximum(x2 + cpn, 0.0)
    return jnp.tanh(ai @ p["w3"] + p["b3"]), ai


# ------------------------- main -----------------------------------------------

if __name__ == "__main__":
    key = jax.random.PRNGKey(0)
    k_state, k_params, k_state2 = jax.random.split(key, 3)

    batch, state_dim, action_dim, hidden_dim = 8, 16, 8, 32
    # TODO(synk): self.limit is stored by the module but never used in forward();
    # load_weights / load_en_weights / zero_weights / freeze_parameters are
    # training/IO utilities, intentionally not part of the kernel.

    params = make_params(k_params, state_dim, action_dim, hidden_dim)
    packed = pack_params(params)

    # --- demo batch (single grid step) ---------------------------------------
    state = jax.random.normal(k_state, (batch, state_dim), jnp.float32)
    out, actor_input = super_lesioned_actor_forward(state, packed)
    out = jax.block_until_ready(out)
    actor_input = jax.block_until_ready(actor_input)

    ref_out, ref_ai = reference_forward(state, params)
    assert out.shape == (batch, action_dim)
    assert actor_input.shape == (batch, 16)
    assert jnp.allclose(out, ref_out, atol=1e-4, rtol=1e-4)
    assert jnp.allclose(actor_input, ref_ai, atol=1e-4, rtol=1e-4)

    # --- larger, non-multiple batch: exercises 2-step grid + batch padding ----
    batch2 = 40
    state2 = jax.random.normal(k_state2, (batch2, state_dim), jnp.float32)
    out2, ai2 = super_lesioned_actor_forward(state2, packed)
    out2 = jax.block_until_ready(out2)
    ai2 = jax.block_until_ready(ai2)
    ref_out2, ref_ai2 = reference_forward(state2, params)
    assert out2.shape == (batch2, action_dim) and ai2.shape == (batch2, 16)
    assert jnp.allclose(out2, ref_out2, atol=1e-4, rtol=1e-4)
    assert jnp.allclose(ai2, ref_ai2, atol=1e-4, rtol=1e-4)

    print("KERNEL_OK")
</pallas_src>

<mosaic_0001>
module attributes {stable_mosaic.version = 11 : i64} {
  func.func @actor_kernel(%arg0: i32, %arg1: memref<8x16xf32, #tpu.memory_space<vmem>>, %arg2: memref<17x512xf32, #tpu.memory_space<vmem>>, %arg3: memref<536x128xf32, #tpu.memory_space<vmem>>, %arg4: memref<1x1xf32, #tpu.memory_space<smem>>, %arg5: memref<8x128xf32, #tpu.memory_space<vmem>>) attributes {dimension_semantics = [#tpu.dimension_semantics<parallel>], iteration_bounds = array<i64: 1>, scalar_prefetch = 0 : i64, scratch_operands = 0 : i64, tpu.core_type = #tpu.core_type<tc>, window_params = [{transform_indices = @transform_0, window_bounds = array<i64: 8, 16>}, {pipeline_mode = #tpu.pipeline_mode<synchronous>, transform_indices = @transform_1, window_bounds = array<i64: 17, 512>}, {pipeline_mode = #tpu.pipeline_mode<synchronous>, transform_indices = @transform_2, window_bounds = array<i64: 536, 128>}, {transform_indices = @transform_3, window_bounds = array<i64: 1, 1>}, {transform_indices = @transform_4, window_bounds = array<i64: 8, 128>}]} {
    %c0 = arith.constant 0 : index
    %c0_0 = arith.constant 0 : index
    %0 = vector.load %arg1[%c0, %c0_0] : memref<8x16xf32, #tpu.memory_space<vmem>>, vector<8x16xf32>
    %c0_1 = arith.constant 0 : index
    %c0_2 = arith.constant 0 : index
    %1 = vector.load %arg2[%c0_1, %c0_2] : memref<17x512xf32, #tpu.memory_space<vmem>>, vector<16x512xf32>
    %c16 = arith.constant 16 : index
    %c0_3 = arith.constant 0 : index
    %2 = vector.load %arg2[%c16, %c0_3] : memref<17x512xf32, #tpu.memory_space<vmem>>, vector<1x512xf32>
    %cst = arith.constant dense<0.000000e+00> : vector<8x512xf32>
    %3 = tpu.matmul %0, %1, %cst {dimension_numbers = #tpu.dot_dimension_numbers<[1], [0], [0], [1], [0, 0, 1, 1], [], []>} : vector<8x16xf32>, vector<16x512xf32>, vector<8x512xf32> -> vector<8x512xf32>
    %4 = vector.broadcast %2 : vector<1x512xf32> to vector<8x512xf32>
    %5 = arith.addf %3, %4 : vector<8x512xf32>
    %cst_4 = arith.constant 0.000000e+00 : f32
    %6 = vector.broadcast %cst_4 : f32 to vector<8x512xf32>
    %7 = arith.maximumf %5, %6 : vector<8x512xf32>
    %c0_5 = arith.constant 0 : index
    %c0_6 = arith.constant 0 : index
    %8 = vector.load %arg3[%c0_5, %c0_6] : memref<536x128xf32, #tpu.memory_space<vmem>>, vector<512x128xf32>
    %cst_7 = arith.constant dense<0.000000e+00> : vector<8x128xf32>
    %9 = tpu.matmul %7, %8, %cst_7 {dimension_numbers = #tpu.dot_dimension_numbers<[1], [0], [0], [1], [0, 0, 1, 1], [], []>} : vector<8x512xf32>, vector<512x128xf32>, vector<8x128xf32> -> vector<8x128xf32>
    %c0_8 = arith.constant 0 : index
    %c0_9 = arith.constant 0 : index
    %10 = memref.load %arg4[%c0_8, %c0_9] : memref<1x1xf32, #tpu.memory_space<smem>>
    %11 = vector.extract_strided_slice %9 {offsets = [0, 0], sizes = [8, 16], strides = [1, 1]} : vector<8x128xf32> to vector<8x16xf32>
    %12 = vector.extract_strided_slice %9 {offsets = [0, 16], sizes = [8, 16], strides = [1, 1]} : vector<8x128xf32> to vector<8x16xf32>
    %13 = math.tanh %12 : vector<8x16xf32>
    %14 = vector.broadcast %10 : f32 to vector<8x16xf32>
    %15 = arith.mulf %13, %14 : vector<8x16xf32>
    %16 = arith.addf %11, %15 : vector<8x16xf32>
    %cst_10 = arith.constant 0.000000e+00 : f32
    %17 = vector.broadcast %cst_10 : f32 to vector<8x16xf32>
    %18 = arith.maximumf %16, %17 : vector<8x16xf32>
    %c512 = arith.constant 512 : index
    %c0_11 = arith.constant 0 : index
    %19 = vector.load %arg3[%c512, %c0_11] : memref<536x128xf32, #tpu.memory_space<vmem>>, vector<16x128xf32>
    %c528 = arith.constant 528 : index
    %c0_12 = arith.constant 0 : index
    %20 = vector.load %arg3[%c528, %c0_12] : memref<536x128xf32, #tpu.memory_space<vmem>>, vector<1x128xf32>
    %cst_13 = arith.constant dense<0.000000e+00> : vector<8x128xf32>
    %21 = tpu.matmul %18, %19, %cst_13 {dimension_numbers = #tpu.dot_dimension_numbers<[1], [0], [0], [1], [0, 0, 1, 1], [], []>} : vector<8x16xf32>, vector<16x128xf32>, vector<8x128xf32> -> vector<8x128xf32>
    %22 = vector.broadcast %20 : vector<1x128xf32> to vector<8x128xf32>
    %23 = arith.addf %21, %22 : vector<8x128xf32>
    %24 = tpu.iota {dimensions = array<i32: 1>} : vector<8x128xi32>
    %c8_i32 = arith.constant 8 : i32
    %25 = vector.broadcast %c8_i32 : i32 to vector<8x128xi32>
    %26 = arith.cmpi slt, %24, %25 : vector<8x128xi32>
    %27 = math.tanh %23 : vector<8x128xf32>
    %28 = arith.select %26, %27, %23 : vector<8x128xi1>, vector<8x128xf32>
    %c0_14 = arith.constant 0 : index
    %c0_15 = arith.constant 0 : index
    %29 = vector.load %arg5[%c0_14, %c0_15] : memref<8x128xf32, #tpu.memory_space<vmem>>, vector<8x128xf32>
    tpu.vector_store %arg5[%c0_14, %c0_15], %28 {strides = array<i32>} : memref<8x128xf32, #tpu.memory_space<vmem>>, vector<8x128xf32>,
    return
  }
  func.func @transform_0(%arg0: i32) -> (i32, i32) {
    %c0_i32 = arith.constant 0 : i32
    %c0_i32_0 = arith.constant 0 : i32
    return %arg0, %c0_i32 : i32, i32
  }
  func.func @transform_1(%arg0: i32) -> (i32, i32) {
    %c0_i32 = arith.constant 0 : i32
    %c0_i32_0 = arith.constant 0 : i32
    %c0_i32_1 = arith.constant 0 : i32
    return %c0_i32, %c0_i32_0 : i32, i32
  }
  func.func @transform_2(%arg0: i32) -> (i32, i32) {
    %c0_i32 = arith.constant 0 : i32
    %c0_i32_0 = arith.constant 0 : i32
    %c0_i32_1 = arith.constant 0 : i32
    return %c0_i32, %c0_i32_0 : i32, i32
  }
  func.func @transform_3(%arg0: i32) -> (i32, i32) {
    %c0_i32 = arith.constant 0 : i32
    %c0_i32_0 = arith.constant 0 : i32
    %c0_i32_1 = arith.constant 0 : i32
    return %c0_i32, %c0_i32_0 : i32, i32
  }
  func.func @transform_4(%arg0: i32) -> (i32, i32) {
    %c0_i32 = arith.constant 0 : i32
    %c0_i32_0 = arith.constant 0 : i32
    return %arg0, %c0_i32 : i32, i32
  }
}

</mosaic_0001>

<bundles_post_ra>
// kernel: tpu_custom_call.1
= control target key start
LH: loop header
LB: loop body
LE: loop exit
PB: predicated region body
PF: predicated region fallthrough
CT: control target
= control target key end

     0   :  { %10 = vsyncpa [#allocation4], 0  ;;  %s919_s0 = inlined_call_operand.hbm [shape: f32[8,16], index: 0, kind: input, shape index: {}]   ;;  %s920_s1 = inlined_call_operand.hbm [shape: f32[17,512], index: 1, kind: input, shape index: {}]   ;;  %s921_s2 = inlined_call_operand.hbm [shape: f32[536,128], index: 2, kind: input, shape index: {}]   ;;  %s922_s3 = inlined_call_operand.<no memory space> [shape: f32[1,1], index: 3, kind: input, shape index: {}]   ;;  %s923_s4 = inlined_call_operand.hbm [shape: f32[8,128], index: 4, kind: output, shape index: {}]  }
   0x1   :  { %11 = vsyncpa [#allocation7], 0 }
   0x2   :  { %12 = vsyncpa [#allocation5], 0  ;;  %s825_s15 = smov [#allocation6]   ;;  %s731_s19 = scalar_lea.hbm %s920_s1, 1536 }
   0x3   :  { %s28_s16 = sshll.u32 %s825_s15, 4  ;;  %p732_p0 = scmp.ne.s32.totalorder %s920_s1, %s731_s19  ;;  %s29_s16 = int_to_ptr.vmem [resolvable:$true] %s28_s16 }
   0x4   :  { %p735_p1 = scmp.lt.u32.totalorder %s731_s19, %s920_s1 }
   0x6   :  { %p737_p2 = pnand %p735_p1, %p732_p0 }
   0x8   :  { %740 = shalt.err (!%p737_p2)
}
   0x9   :  { %s741_s24 = scalar_lea.vmem %s29_s16, 1536  ;;  %p746_p4 = scmp.lt.s32.totalorder %s29_s16, %s29_s16 }
   0xa   :  { %p742_p3 = scmp.ne.s32.totalorder %s29_s16, %s741_s24  ;;  %p747_p5 = scmp.lt.s32.totalorder %s741_s24, %s741_s24 }
   0xc   :  { %p748_p6 = por %p747_p5, %p746_p4 }
   0xe   :  { %p749_p7 = pnand %p748_p6, %p742_p3 }
  0x10   :  { %752 = shalt.err (!%p749_p7)
}
  0x11   :  { %s826_s25 = smov 512   ;;  %s827_s26 = smov 32  }
  0x12   :  { %34 = dma.hbm_to_vmem [thread:$0]  %s920_s1, 1536, %s29_s16, [#allocation7], %s826_s25, %s826_s25, %s827_s26  }
  0x13   :  { %s828_s29 = smov [#allocation3]   ;;  %s829_s5 = smov [#allocation8]  }
  0x14   :  { %s19_s30 = sshll.u32 %s828_s29, 4  ;;  %s40_s6 = sshll.u32 %s829_s5, 4  ;;  %s20_s30 = int_to_ptr.vmem [resolvable:$true] %s19_s30  ;;  %s41_s6 = int_to_ptr.vmem [resolvable:$true] %s40_s6 }
  0x15   :  { %s753_s9 = scalar_lea.hbm %s919_s0, 128 }
  0x16   :  { %p754_p8 = scmp.ne.s32.totalorder %s919_s0, %s753_s9  ;;  %p757_p9 = scmp.lt.u32.totalorder %s753_s9, %s919_s0 }
  0x18   :  { %p759_p10 = pnand %p757_p9, %p754_p8 }
  0x1a   :  { %762 = shalt.err (!%p759_p10)
}
  0x1b   :  { %s763_s1 = scalar_lea.vmem %s20_s30, 128  ;;  %p768_p12 = scmp.lt.s32.totalorder %s20_s30, %s20_s30 }
  0x1c   :  { %p764_p11 = scmp.ne.s32.totalorder %s20_s30, %s763_s1  ;;  %p769_p13 = scmp.lt.s32.totalorder %s763_s1, %s763_s1 }
  0x1e   :  { %p770_p0 = por %p769_p13, %p768_p12 }
  0x20   :  { %p771_p1 = pnand %p770_p0, %p764_p11 }
  0x22   :  { %774 = shalt.err (!%p771_p1)
}
  0x23   :  { %22 = dma.hbm_to_vmem [thread:$0]  %s919_s0, 128, %s20_s30, [#allocation4]  }
  0x24   :  { %s775_s18 = scalar_lea.hbm %s921_s2, 8576 }
  0x25   :  { %p776_p2 = scmp.ne.s32.totalorder %s921_s2, %s775_s18  ;;  %p779_p3 = scmp.lt.u32.totalorder %s775_s18, %s921_s2 }
  0x27   :  { %p781_p4 = pnand %p779_p3, %p776_p2 }
  0x29   :  { %784 = shalt.err (!%p781_p4)
}
  0x2a   :  { %s785_s23 = scalar_lea.vmem %s41_s6, 8576  ;;  %p790_p6 = scmp.lt.s32.totalorder %s41_s6, %s41_s6 }
  0x2b   :  { %p786_p5 = scmp.ne.s32.totalorder %s41_s6, %s785_s23  ;;  %p791_p7 = scmp.lt.s32.totalorder %s785_s23, %s785_s23 }
  0x2d   :  { %p792_p8 = por %p791_p7, %p790_p6 }
  0x2f   :  { %p793_p9 = pnand %p792_p8, %p786_p5 }
  0x31   :  { %796 = shalt.err (!%p793_p9)
}
  0x32   :  { %s830_s0 = smov 128   ;;  %s831_s24 = smov 8  }
  0x33   :  { %46 = dma.hbm_to_vmem [thread:$0]  %s921_s2, 8576, %s41_s6, [#allocation7], %s830_s0, %s830_s0, %s831_s24  }
  0x34   :  { %819 = dma.done.wait [#allocation4], 128  }
  0x35   :  { %820 = vsyncadd [#allocation4], 4294967168 }
  0x36   :  { %821 = dma.done.wait [#allocation7], 10112  }
  0x37   :  { %822 = vsyncadd [#allocation7], 4294957184  ;;  %v832_v0 = vmov 0.0   ;;  %v60_v1 = vld [vmem:[#allocation6 + $0x8] sm:$0xff]  ;;  %v62_v3 = vld [vmem:[#allocation6 + $0x18] sm:$0xff]  ;;  %vm90_vm0 = vcmask 130048  }
  0x38   :  { %158 = vmatprep.mubr.f32.mxu0 %v832_v0  ;;  %229 = vmatprep.mubr.f32.mxu1 %v832_v0  ;;  %v64_v2 = vld [vmem:[#allocation6 + $0x28] sm:$0xff]  ;;  %v66_v5 = vld [vmem:[#allocation6 + $0x38] sm:$0xff]  ;;  %v59_v6 = vld [vmem:[#allocation6] sm:$0xff]  ;;  %vm834_vm1 = vmmov 0   ;;  %s835_s28 = smov 112   ;;  %s836_s29 = smov [#allocation9]  }
  0x39   :  { %v640_v4 = vpack.c.bf16 %v64_v2, %v60_v1  ;;  %v63_v7 = vld [vmem:[#allocation6 + $0x20] sm:$0xff]  ;;  %v644_v8 = vpack.c.bf16 %v66_v5, %v62_v3  ;;  %v61_v10 = vld [vmem:[#allocation6 + $0x10] sm:$0xff]  ;;  %v58_v12 = vld [vmem:[#allocation3] sm:$0xff]  ;;  %s546_s30 = sshll.u32 %s836_s29, 4  ;;  %s547_s30 = int_to_ptr.vmem [resolvable:$true] %s546_s30 }
  0x3a   :  { %v642_v9 = vpack.c.bf16 %v63_v7, %v59_v6  ;;  %v65_v11 = vld [vmem:[#allocation6 + $0x30] sm:$0xff]  ;;  %v256_v14 = vld [vmem:[#allocation8 + $0x80] sm:$0xff]  ;;  %v257_v15 = vld [vmem:[#allocation8 + $0x88] sm:$0xff]  ;;  %p802_p11 = scmp.lt.s32.totalorder %s547_s30, %s547_s30 }
  0x3b   :  { %641 = vmatprep.subr.bf16.mxu0 %v640_v4  ;;  %v646_v13 = vpack.c.bf16 %v65_v11, %v61_v10  ;;  %v288_v16 = vld [vmem:[#allocation8 + $0x180] sm:$0xff]  ;;  %645 = vmatprep.subr.bf16.mxu1 %v644_v8  ;;  %v648_v17 = vpack.c.bf16 %v257_v15, %v256_v14  ;;  %v289_v18 = vld [vmem:[#allocation8 + $0x188] sm:$0xff]  ;;  %v258_v25 = vld [vmem:[#allocation8 + $0x90] sm:$0xff] }
  0x3c   :  { %643 = vmatpush1.bf16.msra.mxu0 %v642_v9  ;;  %v240_v19 = vld [vmem:[#allocation8] sm:$0xff]  ;;  %v241_v20 = vld [vmem:[#allocation8 + $0x8] sm:$0xff]  ;;  %v680_v21 = vpack.c.bf16 %v289_v18, %v288_v16  ;;  %v259_v27 = vld [vmem:[#allocation8 + $0x98] sm:$0xff] }
  0x3d   :  { %647 = vmatpush1.bf16.msra.mxu1 %v646_v13  ;;  %v650_v22 = vpack.c.bf16 %v241_v20, %v240_v19  ;;  %v272_v23 = vld [vmem:[#allocation8 + $0x100] sm:$0xff]  ;;  %v273_v24 = vld [vmem:[#allocation8 + $0x108] sm:$0xff]  ;;  %649 = vmatprep.subr.bf16.mxu0 %v648_v17  ;;  %v290_v28 = vld [vmem:[#allocation8 + $0x190] sm:$0xff]  ;;  %v652_v30 = vpack.c.bf16 %v259_v27, %v258_v25 }
  0x3e   :  { %v682_v26 = vpack.c.bf16 %v273_v24, %v272_v23  ;;  %v291_v29 = vld [vmem:[#allocation8 + $0x198] sm:$0xff]  ;;  %681 = vmatprep.subr.bf16.mxu1 %v680_v21  ;;  %v242_v32 = vld [vmem:[#allocation8 + $0x10] sm:$0xff]  ;;  %v260_v37 = vld [vmem:[#allocation8 + $0xa0] sm:$0xff] }
  0x3f   :  { %556 = vmatmul.mubr.msk.f32.vlgmr.msra.gmra.mrb[0].mxu0 %vm90_vm0, %v58_v12  ;;  %v684_v31 = vpack.c.bf16 %v291_v29, %v290_v28  ;;  %v243_v33 = vld [vmem:[#allocation8 + $0x18] sm:$0xff]  ;;  %v274_v34 = vld [vmem:[#allocation8 + $0x110] sm:$0xff]  ;;  %v261_v38 = vld [vmem:[#allocation8 + $0xa8] sm:$0xff] }
  0x40   :  { %557 = vmatmul.mubr.msk.f32.vlgmr.msra.gmra.mrb[0].mxu1 %vm90_vm0, %v58_v12  ;;  %651 = vmatpush3.bf16.msra.mxu0 %v650_v22  ;;  %v654_v35 = vpack.c.bf16 %v243_v33, %v242_v32  ;;  %v275_v36 = vld [vmem:[#allocation8 + $0x118] sm:$0xff]  ;;  %v656_v40 = vpack.c.bf16 %v261_v38, %v260_v37  ;;  %v292_v41 = vld [vmem:[#allocation8 + $0x1a0] sm:$0xff]  ;;  %v293_v42 = vld [vmem:[#allocation8 + $0x1a8] sm:$0xff] }
  0x41   :  { %683 = vmatpush3.bf16.msra.mxu1 %v682_v26  ;;  %653 = vmatprep.subr.bf16.mxu0 %v652_v30  ;;  %v686_v39 = vpack.c.bf16 %v275_v36, %v274_v34  ;;  %v244_v43 = vld [vmem:[#allocation8 + $0x20] sm:$0xff]  ;;  %v688_v44 = vpack.c.bf16 %v293_v42, %v292_v41  ;;  %v245_v45 = vld [vmem:[#allocation8 + $0x28] sm:$0xff]  ;;  %v262_v48 = vld [vmem:[#allocation8 + $0xb0] sm:$0xff] }
  0x42   :  { %685 = vmatprep.subr.bf16.mxu1 %v684_v31  ;;  %v276_v46 = vld [vmem:[#allocation8 + $0x120] sm:$0xff]  ;;  %v277_v47 = vld [vmem:[#allocation8 + $0x128] sm:$0xff]  ;;  %v263_v49 = vld [vmem:[#allocation8 + $0xb8] sm:$0xff]  ;;  %v658_v51 = vpack.c.bf16 %v245_v45, %v244_v43 }
  0x43   :  { %v294_v50 = vld [vmem:[#allocation8 + $0x1b0] sm:$0xff]  ;;  %v295_v52 = vld [vmem:[#allocation8 + $0x1b8] sm:$0xff]  ;;  %v690_v53 = vpack.c.bf16 %v277_v47, %v276_v46  ;;  %v660_v54 = vpack.c.bf16 %v263_v49, %v262_v48  ;;  %v264_v60 = vld [vmem:[#allocation8 + $0xc0] sm:$0xff]  ;;  %v70_v47 = vlaneseq }
  0x44   :  { %655 = vmatpush3.bf16.msra.mxu0 %v654_v35  ;;  %v246_v55 = vld [vmem:[#allocation8 + $0x30] sm:$0xff]  ;;  %v247_v56 = vld [vmem:[#allocation8 + $0x38] sm:$0xff]  ;;  %v692_v58 = vpack.c.bf16 %v295_v52, %v294_v50  ;;  %v265_v61 = vld [vmem:[#allocation8 + $0xc8] sm:$0xff] }
  0x45   :  { %687 = vmatpush3.bf16.msra.mxu1 %v686_v39  ;;  %657 = vmatprep.subr.bf16.mxu0 %v656_v40  ;;  %v278_v57 = vld [vmem:[#allocation8 + $0x130] sm:$0xff]  ;;  %v279_v59 = vld [vmem:[#allocation8 + $0x138] sm:$0xff]  ;;  %v296_v62 = vld [vmem:[#allocation8 + $0x1c0] sm:$0xff]  ;;  %v662_v1 = vpack.c.bf16 %v247_v56, %v246_v55  ;;  %v664_v3 = vpack.c.bf16 %v265_v61, %v264_v60  ;;  %v71_v48 = vshrl.u32 %v70_v47, 7 }
  0x46   :  { %689 = vmatprep.subr.bf16.mxu1 %v688_v44  ;;  %v297_v63 = vld [vmem:[#allocation8 + $0x1c8] sm:$0xff]  ;;  %v694_v2 = vpack.c.bf16 %v279_v59, %v278_v57  ;;  %v248_v4 = vld [vmem:[#allocation8 + $0x40] sm:$0xff]  ;;  %v266_v9 = vld [vmem:[#allocation8 + $0xd0] sm:$0xff] }
  0x47   :  { %v249_v5 = vld [vmem:[#allocation8 + $0x48] sm:$0xff]  ;;  %v280_v6 = vld [vmem:[#allocation8 + $0x140] sm:$0xff]  ;;  %v696_v7 = vpack.c.bf16 %v297_v63, %v296_v62  ;;  %v267_v10 = vld [vmem:[#allocation8 + $0xd8] sm:$0xff]  ;;  %v72_v49 = vsub.s32 0, %v71_v48  ;;  %v76_v52 = vsub.s32 1, %v71_v48 }
  0x48   :  { %659 = vmatpush3.bf16.msra.mxu0 %v658_v51  ;;  %v281_v8 = vld [vmem:[#allocation8 + $0x148] sm:$0xff]  ;;  %v298_v11 = vld [vmem:[#allocation8 + $0x1d0] sm:$0xff]  ;;  %v299_v12 = vld [vmem:[#allocation8 + $0x1d8] sm:$0xff]  ;;  %v666_v13 = vpack.c.bf16 %v249_v5, %v248_v4  ;;  %v668_v15 = vpack.c.bf16 %v267_v10, %v266_v9  ;;  %v80_v51 = vsub.s32 2, %v71_v48 }
  0x49   :  { %691 = vmatpush3.bf16.msra.mxu1 %v690_v53  ;;  %661 = vmatprep.subr.bf16.mxu0 %v660_v54  ;;  %v698_v14 = vpack.c.bf16 %v281_v8, %v280_v6  ;;  %v250_v16 = vld [vmem:[#allocation8 + $0x50] sm:$0xff]  ;;  %v251_v17 = vld [vmem:[#allocation8 + $0x58] sm:$0xff]  ;;  %v700_v19 = vpack.c.bf16 %v299_v12, %v298_v11  ;;  %v268_v21 = vld [vmem:[#allocation8 + $0xe0] sm:$0xff]  ;;  %v84_v53 = vsub.s32 3, %v71_v48 }
  0x4a   :  { %693 = vmatprep.subr.bf16.mxu1 %v692_v58  ;;  %v282_v18 = vld [vmem:[#allocation8 + $0x150] sm:$0xff]  ;;  %v283_v20 = vld [vmem:[#allocation8 + $0x158] sm:$0xff]  ;;  %v269_v22 = vld [vmem:[#allocation8 + $0xe8] sm:$0xff]  ;;  %v670_v25 = vpack.c.bf16 %v251_v17, %v250_v16  ;;  %v833_v17 = vmov 0.0|0.0  }
  0x4b   :  { %v300_v23 = vld [vmem:[#allocation8 + $0x1e0] sm:$0xff]  ;;  %v301_v24 = vld [vmem:[#allocation8 + $0x1e8] sm:$0xff]  ;;  %v702_v26 = vpack.c.bf16 %v283_v20, %v282_v18  ;;  %v672_v27 = vpack.c.bf16 %v269_v22, %v268_v21  ;;  %v270_v35 = vld [vmem:[#allocation8 + $0xf0] sm:$0xff]  ;;  %v446_v18 = vstv %s922_s3  ;;  %s797_s3 = scalar_lea.vmem %s547_s30, 128 }
  0x4c   :  { %663 = vmatpush3.bf16.msra.mxu0 %v662_v1  ;;  %v704_v28 = vpack.c.bf16 %v301_v24, %v300_v23  ;;  %v252_v29 = vld [vmem:[#allocation8 + $0x60] sm:$0xff]  ;;  %v253_v30 = vld [vmem:[#allocation8 + $0x68] sm:$0xff]  ;;  %v271_v36 = vld [vmem:[#allocation8 + $0xf8] sm:$0xff]  ;;  %p798_p10 = scmp.ne.s32.totalorder %s547_s30, %s797_s3  ;;  %p803_p12 = scmp.lt.s32.totalorder %s797_s3, %s797_s3 }
  0x4d   :  { %695 = vmatpush3.bf16.msra.mxu1 %v694_v2  ;;  %665 = vmatprep.subr.bf16.mxu0 %v664_v3  ;;  %v284_v31 = vld [vmem:[#allocation8 + $0x160] sm:$0xff]  ;;  %v674_v32 = vpack.c.bf16 %v253_v30, %v252_v29  ;;  %v285_v33 = vld [vmem:[#allocation8 + $0x168] sm:$0xff]  ;;  %v302_v37 = vld [vmem:[#allocation8 + $0x1f0] sm:$0xff]  ;;  %v676_v38 = vpack.c.bf16 %v271_v36, %v270_v35 }
  0x4e   :  { %697 = vmatprep.subr.bf16.mxu1 %v696_v7  ;;  %v706_v34 = vpack.c.bf16 %v285_v33, %v284_v31  ;;  %v303_v39 = vld [vmem:[#allocation8 + $0x1f8] sm:$0xff]  ;;  %v254_v40 = vld [vmem:[#allocation8 + $0x70] sm:$0xff]  ;;  %p804_p13 = por %p803_p12, %p802_p11 }
  0x4f   :  { %v255_v41 = vld [vmem:[#allocation8 + $0x78] sm:$0xff]  ;;  %v708_v42 = vpack.c.bf16 %v303_v39, %v302_v37  ;;  %v286_v44 = vld [vmem:[#allocation8 + $0x170] sm:$0xff] }
  0x50   :  { %667 = vmatpush3.bf16.msra.mxu0 %v666_v13  ;;  %v678_v43 = vpack.c.bf16 %v255_v41, %v254_v40  ;;  %v287_v45 = vld [vmem:[#allocation8 + $0x178] sm:$0xff]  ;;  %v558_v24 = vld [vmem:[#allocation8 + $0x210] ss:$0 sm:$0xff]  ;;  %p805_p0 = pnand %p804_p13, %p798_p10 }
  0x51   :  { %699 = vmatpush3.bf16.msra.mxu1 %v698_v14  ;;  %669 = vmatprep.subr.bf16.mxu0 %v668_v15  ;;  %v710_v46 = vpack.c.bf16 %v287_v45, %v286_v44  ;;  %v68_v50 = vld [vmem:[#allocation6 + $0x40] ss:$8 sm:$0xf] }
  0x52   :  { %701 = vmatprep.subr.bf16.mxu1 %v700_v19  ;;  %v73_v54 = vrot.slane %v68_v50, %v72_v49  ;;  %v81_v55 = vrot.slane %v68_v50, %v80_v51  ;;  %v77_v56 = vrot.slane %v68_v50, %v76_v52  ;;  %v85_v57 = vrot.slane %v68_v50, %v84_v53  ;;  %v454_v14 = vld [vmem:[#allocation8 + $0x200] sm:$0xff]  ;;  %v455_v15 = vld [vmem:[#allocation8 + $0x208] sm:$0xff] }
  0x53   :  { %v713_v16 = vpack.c.bf16 %v455_v15, %v454_v14 }
  0x54   :  { %671 = vmatpush3.bf16.msra.mxu0 %v670_v25 }
  0x55   :  { %703 = vmatpush3.bf16.msra.mxu1 %v702_v26  ;;  %673 = vmatprep.subr.bf16.mxu0 %v672_v27 }
  0x56   :  { %705 = vmatprep.subr.bf16.mxu1 %v704_v28  ;;  %v535_v28 = vand.u32 127, %v70_v47 }
  0x58   :  { %675 = vmatpush3.bf16.msra.mxu0 %v674_v32  ;;  %vm536_vm2 = vcmp.lt.s32.totalorder %v535_v28, 8 }
  0x59   :  { %707 = vmatpush3.bf16.msra.mxu1 %v706_v34  ;;  %677 = vmatprep.subr.bf16.mxu0 %v676_v38 }
  0x5a   :  { %709 = vmatprep.subr.bf16.mxu1 %v708_v42 }
  0x5c   :  { %679 = vmatpush3.bf16.msra.mxu0 %v678_v43 }
  0x5d   :  { %711 = vmatpush3.bf16.msra.mxu1 %v710_v46  ;;  %712 = vmatprep.subr.bf16.mxu0 %v833_v17 }
 0x112   :  { %v160_v58 = vpop.f32.mrb[0].mxu0 }
 0x113   :  { %v161_v59 = vadd.f32 %v160_v58, %v73_v54  ;;  %v231_v60 = vpop.f32.mrb[0].mxu1  ;;  %v162_v61 = vpop.f32.mrb[1].mxu0 }
 0x114   :  { %v232_v62 = vadd.f32 %v231_v60, %v81_v55  ;;  %v163_v63 = vadd.f32 %v162_v61, %v77_v56  ;;  %v233_v1 = vpop.f32.mrb[1].mxu1 }
 0x115   :  { %v234_v2 = vadd.f32 %v233_v1, %v85_v57  ;;  %v236_v4 = vmax.f32 %v161_v59, 0.0 }
 0x116   :  { %v237_v3 = vmax.f32 %v163_v63, 0.0  ;;  %v238_v6 = vmax.f32 %v232_v62, 0.0 }
 0x117   :  { %v239_v5 = vmax.f32 %v234_v2, 0.0 }
 0x118   :  { %368 = vmatprep.mubr.f32.mxu0 %v237_v3 }
 0x119   :  { %438 = vmatprep.mubr.f32.mxu1 %v239_v5  ;;  %369 = vmatmul.mubr.f32.vlgmr.msra.gmra.mrb[2].mxu0 %v236_v4 }
 0x11a   :  { %439 = vmatmul.mubr.f32.vlgmr.msra.gmra.mrb[2].mxu1 %v238_v6  ;;  %714 = vmatpush3.bf16.msra.mxu0 %v713_v16 }
 0x11b   :  { %637 = vmatprep.mubr.msk.f32.mxu0 %vm834_vm1, %v832_v0 }
 0x1ec   :  { %v592_v7 = vpop.f32.mrb[2].mxu0 }
 0x1ed   :  { %v627_v8 = vpop.f32.mrb[2].mxu1  ;;  %v593_v9 = vpop.f32.mrb[3].mxu0 }
 0x1ee   :  { %v594_v10 = vadd.f32 %v593_v9, %v592_v7  ;;  %v628_v11 = vpop.f32.mrb[3].mxu1 }
 0x1ef   :  { %v629_v12 = vadd.f32 %v628_v11, %v627_v8 }
 0x1f1   :  { %v441_v13 = vadd.f32 %v629_v12, %v594_v10 }
 0x1f3   :  { %727 = vtanh.f32 %v441_v13 }
 0x1fd   :  { %v728_v19 = vpop.eup %727 }
 0x1fe   :  { %v447_v20 = vmul.f32 %v728_v19, %v446_v18 }
 0x200   :  { %449 = vrot.lane.b32.xlu0 %v447_v20, %s835_s28 }
 0x272   :  { %v450_v21 = vpop.permute.xlu0 %449 }
 0x273   :  { %v452_v22 = vadd.f32 %v450_v21, %v441_v13 }
 0x275   :  { %v453_v23 = vmax.f32 %v452_v22, 0.0 }
 0x277   :  { %638 = vmatmul.mubr.msk.f32.vlgmr.msra.gmra.mrb[4].mxu0 %vm90_vm0, %v453_v23 }
 0x34a   :  { %v530_v25 = vpop.f32.mrb[4].mxu0 }
 0x34b   :  { %v531_v26 = vadd.f32 %v558_v24, %v530_v25  ;;  %v639_v27 = vpop.f32.mrb[5].mxu0 }
 0x34d   :  { %729 = vtanh.f32 %v531_v26 }
 0x357   :  { %v730_v0 = vpop.eup %729 }
 0x358   :  { %v538_v29 = vsel %vm536_vm2, %v730_v0, %v531_v26 }
 0x359   :  { %539 = vst [vmem:[#allocation9] sm:$0xff] %v538_v29 }
 0x35a   :  { %808 = shalt.err (!%p805_p0)
}
 0x35b   :  { %s809_s7 = scalar_lea.hbm %s923_s4, 128 }
 0x35c   :  { %p810_p1 = scmp.ne.s32.totalorder %s923_s4, %s809_s7  ;;  %p813_p2 = scmp.lt.u32.totalorder %s809_s7, %s923_s4 }
 0x35e   :  { %p815_p3 = pnand %p813_p2, %p810_p1 }
 0x360   :  { %818 = shalt.err (!%p815_p3)
}
 0x361   :  { %549 = dma.vmem_to_hbm [thread:$0]  %s547_s30, 128, %s923_s4, [#allocation5]  }
 0x362   :  { %823 = dma.done.wait [#allocation5], 128  }
 0x363   :  { %824 = vsyncadd [#allocation5], 4294967168 }
 0x364   :  { %553 = vsyncpa [#allocation4], 1 }
 0x365   :  { %554 = vsyncpa [#allocation7], 1 }
 0x366   :  { %555 = vsyncpa [#allocation5], 1 }

</bundles_post_ra>
